<compile_context>
chip_gen: v5e
topology: v5e:2x2
jax: 0.10.0
libtpu: 0.0.40
codegen_flags: <defaults>
</compile_context>

<pallas_src>
import jax
import jax.numpy as jnp
from jax.experimental import pallas as pl
from jax.experimental.pallas import tpu as pltpu

_LANES = 128
_SUBLANES = 8


def _cdiv(a, b):
    return -(-a // b)


def _make_mse_partial_kernel(rows_total, tile_rows, tiles_per_core, needs_mask):
    """Build a kernel accumulating per-core partial sums of (s - t)^2 into (1,8,128)."""

    def kernel(s_ref, t_ref, o_ref):
        c = pl.program_id(0)
        i = pl.program_id(1)

        @pl.when(i == 0)
        def _():
            o_ref[...] = jnp.zeros_like(o_ref)

        # Logical row offset of this tile (used only for masking ragged /
        # duplicated-clamped tiles; everything is static except c, i).
        row_start = (c * tiles_per_core + i) * tile_rows

        def accumulate(apply_mask):
            d = s_ref[...].astype(jnp.float32) - t_ref[...].astype(jnp.float32)
            sq = d * d
            if apply_mask:
                ids = jax.lax.broadcasted_iota(jnp.int32, (tile_rows, _LANES), 0)
                sq = jnp.where(ids < (rows_total - row_start), sq, 0.0)
            # (tile_rows,128) -> (tile_rows/8, 8, 128) -> sum over axis 0:
            # sublane-aligned, pure VPU vreg adds; accumulator stays lane-dense.
            partial = jnp.sum(sq.reshape(-1, _SUBLANES, _LANES), axis=0)
            o_ref[...] += partial[None]

        if needs_mask:
            is_full = row_start + tile_rows <= rows_total
            pl.when(is_full)(lambda: accumulate(False))
            pl.when(jnp.logical_not(is_full))(lambda: accumulate(True))
        else:
            accumulate(False)

    return kernel


def distillation_mse_loss(student, teacher, *, tile_rows=1024, num_partials=1,
                          core_parallel=False):
    """Mean-squared-error distillation loss between matching feature maps.

    student, teacher: arrays of identical shape (any rank, e.g. NCHW), f32 or bf16.
    Returns a scalar f32 loss = mean((student - teacher)^2).

    v7x tuning: num_partials=2 (+ core_parallel=True) and tile_rows=2048-4096.
    """
    assert student.shape == teacher.shape, "student/teacher shapes must match"
    n_elems = int(student.size)
    if n_elems == 0:
        return jnp.float32(0.0)

    itemsize = int(jnp.dtype(student.dtype).itemsize)
    # Rows per packed sublane group: 8 for f32, 16 for bf16, 32 for int8/fp8.
    packing = _SUBLANES * max(1, 4 // itemsize)

    s_flat = student.reshape(-1)
    t_flat = teacher.reshape(-1)

    tail = n_elems % _LANES
    main_elems = n_elems - tail
    rows_total = main_elems // _LANES

    # Tiny inputs: per-call overhead dominates any kernel win — plain JAX.
    if rows_total < packing:
        d = s_flat.astype(jnp.float32) - t_flat.astype(jnp.float32)
        return jnp.sum(d * d) / jnp.float32(n_elems)

    tail_sum = jnp.float32(0.0)
    if tail:
        # TODO(synk): when n_elems is not a multiple of 128 this prefix/tail split
        # costs one extra copy of the inputs; typical feature-map shapes are
        # 128-divisible, so the common path below is a zero-copy bitcast reshape.
        d_tail = (s_flat[main_elems:].astype(jnp.float32)
                  - t_flat[main_elems:].astype(jnp.float32))
        tail_sum = jnp.sum(d_tail * d_tail)
        s_flat = s_flat[:main_elems]
        t_flat = t_flat[:main_elems]

    s2d = s_flat.reshape(rows_total, _LANES)
    t2d = t_flat.reshape(rows_total, _LANES)

    # Tile size: as large as requested, capped by the array, dtype-packing aligned.
    tile_rows = max(packing, (min(int(tile_rows), rows_total) // packing) * packing)

    total_tiles = _cdiv(rows_total, tile_rows)
    num_partials = max(1, min(int(num_partials), total_tiles))
    tiles_per_core = _cdiv(total_tiles, num_partials)
    over_cover = num_partials * tiles_per_core > total_tiles
    needs_mask = num_partials * tiles_per_core * tile_rows != rows_total

    kernel = _make_mse_partial_kernel(rows_total, tile_rows, tiles_per_core,
                                      needs_mask)

    if over_cover:
        # Some logical tiles land past the array; clamp the DMA to the last valid
        # block — the in-kernel mask (logical offset >= rows_total) zeroes them.
        def in_index(c, i):
            return (jnp.minimum(c * tiles_per_core + i, total_tiles - 1), 0)
    else:
        def in_index(c, i):
            return (c * tiles_per_core + i, 0)

    in_spec = pl.BlockSpec((tile_rows, _LANES), in_index)
    out_spec = pl.BlockSpec((1, _SUBLANES, _LANES), lambda c, i: (c, 0, 0))

    if num_partials > 1:
        lead = pltpu.CORE_PARALLEL if core_parallel else pltpu.PARALLEL
        dims = (lead, pltpu.ARBITRARY)
    else:
        dims = (pltpu.ARBITRARY, pltpu.ARBITRARY)

    # Advisory cost: 3 VPU ops/elem (sub, mul, add); HBM bytes = read both inputs.
    cost = pl.CostEstimate(
        flops=3 * main_elems,
        transcendentals=0,
        bytes_accessed=2 * main_elems * itemsize
        + num_partials * _SUBLANES * _LANES * 4,
    )

    # Double-buffered input VMEM; only raise the scoped limit if a big requested
    # tile actually needs it (leave headroom — v7x has 64 MiB physical VMEM).
    dbl_buf_bytes = 2 * 2 * tile_rows * _LANES * itemsize
    vmem_limit = dbl_buf_bytes + (8 << 20) if dbl_buf_bytes > (24 << 20) else None

    partials = pl.pallas_call(
        kernel,
        out_shape=jax.ShapeDtypeStruct((num_partials, _SUBLANES, _LANES),
                                       jnp.float32),
        grid_spec=pltpu.PrefetchScalarGridSpec(
            num_scalar_prefetch=0,
            grid=(num_partials, tiles_per_core),
            in_specs=[in_spec, in_spec],
            out_specs=out_spec,
        ),
        compiler_params=pltpu.CompilerParams(
            dimension_semantics=dims,
            vmem_limit_bytes=vmem_limit,
        ),
        cost_estimate=cost,
    )(s2d, t2d)

    return (tail_sum + jnp.sum(partials)) / jnp.float32(n_elems)


class BaseDistillationJAX:
    """JAX mirror of BaseDistillation: stores init_cfg; forward = distillation loss."""

    def __init__(self, init_cfg=None):
        self.init_cfg = init_cfg

    def forward(self, student, teacher, **kwargs):
        # TODO(synk): the reference forward is @abstractmethod; this MSE feature
        # loss is a representative concrete subclass forward.
        if isinstance(student, (tuple, list)):
            assert isinstance(teacher, (tuple, list)) and len(student) == len(teacher)
            losses = [distillation_mse_loss(s, t, **kwargs)
                      for s, t in zip(student, teacher)]
            return sum(losses) / len(losses)
        return distillation_mse_loss(student, teacher, **kwargs)

    __call__ = forward

    def __repr__(self):
        s = f"{self.__class__.__name__}()"
        if self.init_cfg:
            s += f"\ninit_cfg={self.init_cfg}"
        return s


if __name__ == "__main__":
    key = jax.random.PRNGKey(0)
    k_s, k_t = jax.random.split(key)

    module = BaseDistillationJAX(init_cfg={"type": "synthetic"})

    # 1) f32 NCHW features, 128-divisible element count (zero-copy fast path).
    s32 = jax.random.normal(k_s, (2, 4, 16, 16), dtype=jnp.float32)
    t32 = jax.random.normal(k_t, (2, 4, 16, 16), dtype=jnp.float32)
    loss = jax.block_until_ready(module.forward(s32, t32))
    ref = jnp.mean((s32 - t32) ** 2)
    assert jnp.allclose(loss, ref, rtol=1e-5, atol=1e-6), (loss, ref)

    # 2) bf16 features (half-byte streaming; kernel accumulates in f32).
    sb = s32.astype(jnp.bfloat16)
    tb = t32.astype(jnp.bfloat16)
    loss_b = jax.block_until_ready(module.forward(sb, tb))
    ref_b = jnp.mean((sb.astype(jnp.float32) - tb.astype(jnp.float32)) ** 2)
    assert jnp.allclose(loss_b, ref_b, rtol=1e-4, atol=1e-5), (loss_b, ref_b)

    # 3) element count not a multiple of 128: ragged tile mask + plain-JAX tail.
    k_s2, k_t2 = jax.random.split(jax.random.PRNGKey(1))
    s3 = jax.random.normal(k_s2, (2, 3, 20, 20), dtype=jnp.float32)
    t3 = jax.random.normal(k_t2, (2, 3, 20, 20), dtype=jnp.float32)
    loss3 = jax.block_until_ready(distillation_mse_loss(s3, t3))
    ref3 = jnp.mean((s3 - t3) ** 2)
    assert jnp.allclose(loss3, ref3, rtol=1e-5, atol=1e-6), (loss3, ref3)

    # 4) 2-way partial split with a tiny tile: exercises the clamped index_map and
    #    the fully-masked duplicate-tile path (v7x-style leading axis).
    loss4 = jax.block_until_ready(
        distillation_mse_loss(s3, t3, tile_rows=8, num_partials=2))
    assert jnp.allclose(loss4, ref3, rtol=1e-5, atol=1e-6), (loss4, ref3)

    print("KERNEL_OK")
</pallas_src>

<mosaic_0001>
module attributes {stable_mosaic.version = 11 : i64} {
  func.func @kernel(%arg0: i32, %arg1: i32, %arg2: memref<16x128xf32, #tpu.memory_space<vmem>>, %arg3: memref<16x128xf32, #tpu.memory_space<vmem>>, %arg4: memref<1x8x128xf32, #tpu.memory_space<vmem>>) attributes {dimension_semantics = [#tpu.dimension_semantics<arbitrary>, #tpu.dimension_semantics<arbitrary>], iteration_bounds = array<i64: 1, 1>, scalar_prefetch = 0 : i64, scratch_operands = 0 : i64, tpu.core_type = #tpu.core_type<tc>, window_params = [{transform_indices = @transform_0, window_bounds = array<i64: 16, 128>}, {transform_indices = @transform_1, window_bounds = array<i64: 16, 128>}, {transform_indices = @transform_2, window_bounds = array<i64: 1, 8, 128>}]} {
    %c0_i32 = arith.constant 0 : i32
    %0 = arith.cmpi eq, %arg1, %c0_i32 : i32
    %1 = arith.extui %0 : i1 to i32
    %c0_i32_0 = arith.constant 0 : i32
    %2 = arith.cmpi ne, %1, %c0_i32_0 : i32
    scf.if %2 {
      %cst_10 = arith.constant 0.000000e+00 : f32
      %13 = vector.broadcast %cst_10 : f32 to vector<1x8x128xf32>
      %c0_11 = arith.constant 0 : index
      %c0_12 = arith.constant 0 : index
      %c0_13 = arith.constant 0 : index
      %14 = vector.load %arg4[%c0_11, %c0_12, %c0_13] : memref<1x8x128xf32, #tpu.memory_space<vmem>>, vector<1x8x128xf32>
      tpu.vector_store %arg4[%c0_11, %c0_12, %c0_13], %13 {strides = array<i32>} : memref<1x8x128xf32, #tpu.memory_space<vmem>>, vector<1x8x128xf32>,
    } else {
    }
    %c0 = arith.constant 0 : index
    %c0_1 = arith.constant 0 : index
    %3 = vector.load %arg2[%c0, %c0_1] : memref<16x128xf32, #tpu.memory_space<vmem>>, vector<16x128xf32>
    %c0_2 = arith.constant 0 : index
    %c0_3 = arith.constant 0 : index
    %4 = vector.load %arg3[%c0_2, %c0_3] : memref<16x128xf32, #tpu.memory_space<vmem>>, vector<16x128xf32>
    %5 = arith.subf %3, %4 : vector<16x128xf32>
    %6 = arith.mulf %5, %5 : vector<16x128xf32>
    %7 = vector.shape_cast %6 : vector<16x128xf32> to vector<2x8x128xf32>
    %cst = arith.constant dense<0.000000e+00> : vector<8x128xf32>
    %8 = vector.multi_reduction <add>, %7, %cst [0] : vector<2x8x128xf32> to vector<8x128xf32>
    %c0_4 = arith.constant 0 : index
    %c0_5 = arith.constant 0 : index
    %c0_6 = arith.constant 0 : index
    %9 = vector.load %arg4[%c0_4, %c0_5, %c0_6] : memref<1x8x128xf32, #tpu.memory_space<vmem>>, vector<1x8x128xf32>
    %10 = vector.shape_cast %8 : vector<8x128xf32> to vector<1x8x128xf32>
    %11 = arith.addf %9, %10 : vector<1x8x128xf32>
    %c0_7 = arith.constant 0 : index
    %c0_8 = arith.constant 0 : index
    %c0_9 = arith.constant 0 : index
    %12 = vector.load %arg4[%c0_7, %c0_8, %c0_9] : memref<1x8x128xf32, #tpu.memory_space<vmem>>, vector<1x8x128xf32>
    tpu.vector_store %arg4[%c0_7, %c0_8, %c0_9], %11 {strides = array<i32>} : memref<1x8x128xf32, #tpu.memory_space<vmem>>, vector<1x8x128xf32>,
    return
  }
  func.func @transform_0(%arg0: i32, %arg1: i32) -> (i32, i32) {
    %c1_i32 = arith.constant 1 : i32
    %0 = arith.muli %arg0, %c1_i32 : i32
    %1 = arith.addi %0, %arg1 : i32
    %c0_i32 = arith.constant 0 : i32
    %c0_i32_0 = arith.constant 0 : i32
    return %1, %c0_i32 : i32, i32
  }
  func.func @transform_1(%arg0: i32, %arg1: i32) -> (i32, i32) {
    %c1_i32 = arith.constant 1 : i32
    %0 = arith.muli %arg0, %c1_i32 : i32
    %1 = arith.addi %0, %arg1 : i32
    %c0_i32 = arith.constant 0 : i32
    %c0_i32_0 = arith.constant 0 : i32
    return %1, %c0_i32 : i32, i32
  }
  func.func @transform_2(%arg0: i32, %arg1: i32) -> (i32, i32, i32) {
    %c0_i32 = arith.constant 0 : i32
    %c0_i32_0 = arith.constant 0 : i32
    %c0_i32_1 = arith.constant 0 : i32
    return %arg0, %c0_i32, %c0_i32_0 : i32, i32, i32
  }
}

</mosaic_0001>

<bundles_post_ra>
// kernel: tpu_custom_call.1
= control target key start
LH: loop header
LB: loop body
LE: loop exit
PB: predicated region body
PF: predicated region fallthrough
CT: control target
= control target key end

     0   :  { %7 = vsyncpa [#allocation3], 0  ;;  %s204_s0 = inlined_call_operand.hbm [shape: f32[16,128], index: 0, kind: input, shape index: {}]   ;;  %s205_s1 = inlined_call_operand.hbm [shape: f32[16,128], index: 1, kind: input, shape index: {}]   ;;  %s206_s2 = inlined_call_operand.hbm [shape: f32[1,8,128], index: 2, kind: output, shape index: {}]  }
   0x1   :  { %8 = vsyncpa [#allocation6], 0 }
   0x2   :  { %9 = vsyncpa [#allocation4], 0  ;;  %s18_s11 = sshll.u32 %s204_s0, 4  ;;  %s175_s12 = smov [#allocation2]   ;;  %s19_s11 = int_to_ptr.hbm [resolvable:$true] %s18_s11 }
   0x3   :  { %s20_s13 = sshll.u32 %s175_s12, 4  ;;  %s35_s16 = sshll.u32 %s205_s1, 4  ;;  %s21_s13 = int_to_ptr.vmem [resolvable:$true] %s20_s13  ;;  %s36_s16 = int_to_ptr.hbm [resolvable:$true] %s35_s16 }
   0x4   :  { %s176_s17 = smov 128   ;;  %s177_s18 = smov 8  }
   0x5   :  { %26 = dma.hbm_to_vmem [thread:$0]  %s19_s11, 256, %s21_s13, [#allocation3], %s176_s17, %s176_s17, %s177_s18  }
   0x6   :  { %s178_s19 = smov [#allocation5]  }
   0x7   :  { %s37_s20 = sshll.u32 %s178_s19, 4  ;;  %s38_s20 = int_to_ptr.vmem [resolvable:$true] %s37_s20 }
   0x8   :  { %43 = dma.hbm_to_vmem [thread:$0]  %s36_s16, 256, %s38_s20, [#allocation6], %s176_s17, %s176_s17, %s177_s18  }
   0x9   :  { %169 = dma.done.wait [#allocation3], 256  }
   0xa   :  { %170 = vsyncadd [#allocation3], 4294967040 }
   0xb   :  { %171 = dma.done.wait [#allocation6], 256  }
   0xc   :  { %172 = vsyncadd [#allocation6], 4294967040  ;;  %v61_v0 = vld [vmem:[#allocation2] sm:$0xff]  ;;  %v62_v1 = vld [vmem:[#allocation2 + $0x8] sm:$0xff]  ;;  %s179_s0 = smov [#allocation7]   ;;  %s80_s23 = sshll.u32 %s206_s2, 4  ;;  %s81_s23 = int_to_ptr.hbm [resolvable:$true] %s80_s23 }
   0xd   :  { %v63_v2 = vld [vmem:[#allocation5] sm:$0xff]  ;;  %v64_v3 = vld [vmem:[#allocation5 + $0x8] sm:$0xff]  ;;  %s78_s1 = sshll.u32 %s179_s0, 4  ;;  %s79_s1 = int_to_ptr.vmem [resolvable:$true] %s78_s1 }
   0xe   :  { %v65_v4 = vsub.f32 %v61_v0, %v63_v2  ;;  %v66_v5 = vsub.f32 %v62_v1, %v64_v3 }
  0x10   :  { %v67_v6 = vmul.f32 %v65_v4, %v65_v4  ;;  %v68_v7 = vmul.f32 %v66_v5, %v66_v5 }
  0x12   :  { %v69_v8 = vadd.f32 %v68_v7, %v67_v6 }
  0x14   :  { %72 = vst [vmem:[#allocation7] sm:$0xff] %v69_v8 }
  0x15   :  { %83 = dma.vmem_to_hbm [thread:$0]  %s79_s1, 128, %s81_s23, [#allocation4]  }
  0x16   :  { %173 = dma.done.wait [#allocation4], 128  }
  0x17   :  { %174 = vsyncadd [#allocation4], 4294967168 }
  0x18   :  { %88 = vsyncpa [#allocation3], 1 }
  0x19   :  { %89 = vsyncpa [#allocation6], 1 }
  0x1a   :  { %90 = vsyncpa [#allocation4], 1 }

</bundles_post_ra>
